<compile_context>
chip_gen: v7x
topology: tpu7x:2x2x1
jax: 0.10.0
libtpu: 0.0.40
codegen_flags: <defaults>
</compile_context>

<pallas_src>
import functools

import jax
import jax.numpy as jnp
from jax import lax
from jax.experimental import pallas as pl
from jax.experimental.pallas import tpu as pltpu


def _elementwise_loss(pred, tgt, loss_type):
    diff = pred - tgt
    if loss_type == "mse":
        return diff * diff
    if loss_type == "l1":
        return jnp.abs(diff)
    if loss_type == "smooth_l1":
        ad = jnp.abs(diff)          # PyTorch SmoothL1Loss default beta = 1.0
        return jnp.where(ad < 1.0, 0.5 * diff * diff, ad - 0.5)
    raise ValueError(f"Unknown loss type: {loss_type}")


def _masked_loss_kernel(pred_ref, tgt_ref, mask_ref,
                        out_loss_ref, out_mask_ref,
                        acc_loss_ref, acc_mask_ref, *,
                        loss_type, rows, tile_rows, blocks_per_core,
                        needs_row_mask):
    i = pl.program_id(1)  # reduction axis (row blocks handled by this split)

    @pl.when(i == 0)
    def _():
        acc_loss_ref[...] = jnp.zeros_like(acc_loss_ref)
        acc_mask_ref[...] = jnp.zeros_like(acc_mask_ref)

    pred = pred_ref[...].astype(jnp.float32)
    tgt = tgt_ref[...].astype(jnp.float32)
    m = mask_ref[...].astype(jnp.float32)

    mloss = _elementwise_loss(pred, tgt, loss_type) * m

    if needs_row_mask:
        # The last block of a split may hang past `rows`, and when the block
        # count does not divide across splits some (c, i) steps are phantom
        # re-reads of the last real block.  Those rows hold unspecified data,
        # so they must be select-zeroed (garbage could be NaN/Inf; multiplying
        # by 0 would propagate it).
        c = pl.program_id(0)
        b = c * blocks_per_core + i
        row_ids = b * tile_rows + lax.broadcasted_iota(jnp.int32, pred.shape, 0)
        ok = row_ids < rows
        mloss = jnp.where(ok, mloss, 0.0)
        m = jnp.where(ok, m, 0.0)

    # Fold the tile into small (1, L) f32 accumulators (partial reduce instead
    # of a full-tile accumulator read-modify-write).
    acc_loss_ref[...] += jnp.sum(mloss, axis=0, keepdims=True)
    acc_mask_ref[...] += jnp.sum(m, axis=0, keepdims=True)

    # Single cross-lane reduce + broadcast writeback on the last step only.
    @pl.when(i == pl.num_programs(1) - 1)
    def _():
        out_loss_ref[...] = jnp.zeros_like(out_loss_ref) + jnp.sum(acc_loss_ref[...])
        out_mask_ref[...] = jnp.zeros_like(out_mask_ref) + jnp.sum(acc_mask_ref[...])


def _device_defaults():
    """Per-generation defaults: (max_tile_rows, num_core_splits)."""
    max_tile_rows, num_core_splits = 1024, 1
    try:
        kind = jax.devices()[0].device_kind.lower()
    except Exception:
        return max_tile_rows, num_core_splits
    if "v6" in kind:
        max_tile_rows = 2048            # 128 MiB VMEM: bigger blocks are free
    if "v7" in kind or "7x" in kind:
        max_tile_rows, num_core_splits = 2048, 2   # 2 TensorCores, 64 MiB VMEM
    return max_tile_rows, num_core_splits


def segformer_intensity_loss(predictions, targets, valid_mask,
                             loss_type: str = "mse",
                             max_tile_rows: int = None,
                             num_core_splits: int = None):
    """predictions/targets/valid_mask: (B, 1, H, W). Returns scalar float32."""
    assert predictions.shape == targets.shape == valid_mask.shape

    n = int(predictions.size)

    # Keep the mask narrow (bool travels as uint8; never widen to f32 here).
    if valid_mask.dtype == jnp.bool_:
        valid_mask = valid_mask.astype(jnp.uint8)

    dflt_tile, dflt_splits = _device_defaults()
    if max_tile_rows is None:
        max_tile_rows = dflt_tile
    if num_core_splits is None:
        num_core_splits = dflt_splits

    # Lane-dense 2-D view without jnp.pad: widest L in {512,256,128} dividing n.
    L = 512
    for cand in (512, 256, 128):
        if n % cand == 0:
            L = cand
            break
    rows = n // L
    tail = n - rows * L

    pf = predictions.reshape(-1)
    tf = targets.reshape(-1)
    mf = valid_mask.reshape(-1)

    loss_sum = jnp.float32(0.0)
    mask_sum = jnp.float32(0.0)

    if tail:
        # <512 elements: negligible XLA-side tail path.
        tp = pf[rows * L:].astype(jnp.float32)
        tt = tf[rows * L:].astype(jnp.float32)
        tm = mf[rows * L:].astype(jnp.float32)
        loss_sum = loss_sum + jnp.sum(_elementwise_loss(tp, tt, loss_type) * tm)
        mask_sum = mask_sum + jnp.sum(tm)

    if rows > 0:
        if tail:
            # TODO(synk): XLA may materialize this prefix slice; fold the <L
            # tail into the kernel's last block to make the ragged case fully
            # copy-free as well.
            pf, tf, mf = pf[:rows * L], tf[:rows * L], mf[:rows * L]
        p2 = pf.reshape(rows, L)
        t2 = tf.reshape(rows, L)
        m2 = mf.reshape(rows, L)

        # Keep the per-step block byte budget roughly constant regardless of L.
        tile_rows = max_tile_rows * (512 // L)
        if rows <= tile_rows:
            tile_rows = rows            # single full-extent block
        num_blocks = pl.cdiv(rows, tile_rows)
        splits = num_core_splits if num_blocks >= num_core_splits else 1
        blocks_per_core = pl.cdiv(num_blocks, splits)
        has_phantom = splits * blocks_per_core != num_blocks
        needs_row_mask = (rows % tile_rows != 0) or has_phantom

        if has_phantom:
            def in_map(c, i):
                return (jnp.minimum(c * blocks_per_core + i, num_blocks - 1), 0)
        else:
            def in_map(c, i):
                return (c * blocks_per_core + i, 0)

        in_spec = pl.BlockSpec((tile_rows, L), in_map)
        out_spec = pl.BlockSpec((1, 8, 128), lambda c, i: (c, 0, 0))
        out_shape = jax.ShapeDtypeStruct((splits, 8, 128), jnp.float32)

        kernel = functools.partial(
            _masked_loss_kernel, loss_type=loss_type, rows=rows,
            tile_rows=tile_rows, blocks_per_core=blocks_per_core,
            needs_row_mask=needs_row_mask)

        # VMEM budget derived from the actual footprint.
        in_bytes = 2 * tile_rows * L * (p2.dtype.itemsize + t2.dtype.itemsize
                                        + m2.dtype.itemsize)
        out_bytes = 2 * 2 * splits * 8 * 128 * 4
        acc_bytes = 2 * L * 4
        vmem_limit = in_bytes + out_bytes + acc_bytes + (8 << 20)  # Mosaic slack
        vmem_limit = int(min(max(vmem_limit, 16 << 20), 96 << 20))

        # TODO(synk): on v7x, confirm both TensorCores engage with "parallel";
        # if not, switch axis 0 to pltpu.CORE_PARALLEL.
        sem = ("parallel" if splits > 1 else "arbitrary", "arbitrary")

        part_loss, part_mask = pl.pallas_call(
            kernel,
            out_shape=(out_shape, out_shape),
            grid_spec=pltpu.PrefetchScalarGridSpec(
                num_scalar_prefetch=0,
                grid=(splits, blocks_per_core),
                in_specs=[in_spec, in_spec, in_spec],
                out_specs=[out_spec, out_spec],
                scratch_shapes=[pltpu.VMEM((1, L), jnp.float32),
                                pltpu.VMEM((1, L), jnp.float32)],
            ),
            compiler_params=pltpu.CompilerParams(
                dimension_semantics=sem,
                vmem_limit_bytes=vmem_limit,
            ),
        )(p2, t2, m2)

        loss_sum = loss_sum + jnp.sum(part_loss[:, 0, 0])
        mask_sum = mask_sum + jnp.sum(part_mask[:, 0, 0])

    # if num_valid > 0: sum / num_valid else sum * 0.0   (matches PyTorch)
    return jnp.where(mask_sum > 0.0, loss_sum / mask_sum, loss_sum * 0.0)


def _reference(predictions, targets, valid_mask, loss_type="mse"):
    p = predictions.astype(jnp.float32)
    t = targets.astype(jnp.float32)
    d = p - t
    if loss_type == "mse":
        loss = d * d
    elif loss_type == "l1":
        loss = jnp.abs(d)
    else:
        ad = jnp.abs(d)
        loss = jnp.where(ad < 1.0, 0.5 * d * d, ad - 0.5)
    m = valid_mask.astype(jnp.float32)
    nv = m.sum()
    ms = (loss * m).sum()
    return jnp.where(nv > 0, ms / nv, ms * 0.0)


if __name__ == "__main__":
    key = jax.random.PRNGKey(0)
    k1, k2, k3 = jax.random.split(key, 3)
    ok = True

    def check(pred, tgt, mask, lt, **kw):
        out = jax.block_until_ready(
            segformer_intensity_loss(pred, tgt, mask, loss_type=lt, **kw))
        ref = _reference(pred, tgt, mask, lt)
        return bool(jnp.allclose(out, ref, rtol=1e-5, atol=1e-5))

    # (B,1,H,W) = (2,1,16,16): n = 512, fully lane-aligned, single block.
    B, C, H, W = 2, 1, 16, 16
    p = jax.random.normal(k1, (B, C, H, W), dtype=jnp.float32)
    t = jax.random.normal(k2, (B, C, H, W), dtype=jnp.float32)
    m = (jax.random.uniform(k3, (B, C, H, W)) > 0.3).astype(jnp.float32)
    for lt in ("mse", "l1", "smooth_l1"):
        ok = ok and check(p, t, m, lt)

    # Boolean mask (kept narrow — travels as uint8).
    mb = jax.random.uniform(k3, (B, C, H, W)) > 0.3
    ok = ok and check(p, t, mb, "mse")

    # Non-lane-aligned shape: exercises the tiny XLA-side tail path.
    p2 = jax.random.normal(k1, (2, 1, 17, 23), dtype=jnp.float32)
    t2 = jax.random.normal(k2, (2, 1, 17, 23), dtype=jnp.float32)
    m2 = (jax.random.uniform(k3, (2, 1, 17, 23)) > 0.5).astype(jnp.float32)
    ok = ok and check(p2, t2, m2, "mse")

    # Multi-block grid with a partial (OOB-masked) last block, and a 2-way
    # split (phantom-block clamp path).
    p3 = jax.random.normal(k1, (2, 1, 10, 512), dtype=jnp.float32)   # rows = 20
    t3 = jax.random.normal(k2, (2, 1, 10, 512), dtype=jnp.float32)
    m3 = (jax.random.uniform(k3, (2, 1, 10, 512)) > 0.4).astype(jnp.float32)
    ok = ok and check(p3, t3, m3, "smooth_l1", max_tile_rows=8, num_core_splits=1)
    ok = ok and check(p3, t3, m3, "mse", max_tile_rows=8, num_core_splits=2)

    # num_valid == 0 branch.
    z = jnp.zeros((B, C, H, W), dtype=jnp.float32)
    out0 = jax.block_until_ready(
        segformer_intensity_loss(p, t, z, loss_type="mse"))
    ok = ok and bool(jnp.allclose(out0, 0.0))

    print("KERNEL_OK" if ok else "KERNEL_MISMATCH")
</pallas_src>

<mosaic_0001>
module attributes {stable_mosaic.version = 11 : i64} {
  func.func @_masked_loss_kernel(%arg0: i32, %arg1: i32, %arg2: memref<1x512xf32, #tpu.memory_space<vmem>>, %arg3: memref<1x512xf32, #tpu.memory_space<vmem>>, %arg4: memref<1x512xf32, #tpu.memory_space<vmem>>, %arg5: memref<1x8x128xf32, #tpu.memory_space<vmem>>, %arg6: memref<1x8x128xf32, #tpu.memory_space<vmem>>, %arg7: memref<1x512xf32, #tpu.memory_space<vmem>>, %arg8: memref<1x512xf32, #tpu.memory_space<vmem>>) attributes {dimension_semantics = [#tpu.dimension_semantics<arbitrary>, #tpu.dimension_semantics<arbitrary>], iteration_bounds = array<i64: 1, 1>, scalar_prefetch = 0 : i64, scratch_operands = 2 : i64, tpu.core_type = #tpu.core_type<tc>, window_params = [{transform_indices = @transform_0, window_bounds = array<i64: 1, 512>}, {transform_indices = @transform_1, window_bounds = array<i64: 1, 512>}, {transform_indices = @transform_2, window_bounds = array<i64: 1, 512>}, {transform_indices = @transform_3, window_bounds = array<i64: 1, 8, 128>}, {transform_indices = @transform_4, window_bounds = array<i64: 1, 8, 128>}]} {
    %c0_i32 = arith.constant 0 : i32
    %0 = arith.cmpi eq, %arg1, %c0_i32 : i32
    %1 = arith.extui %0 : i1 to i32
    %c0_i32_0 = arith.constant 0 : i32
    %2 = arith.cmpi ne, %1, %c0_i32_0 : i32
    scf.if %2 {
      %cst_17 = arith.constant 0.000000e+00 : f32
      %22 = vector.broadcast %cst_17 : f32 to vector<1x512xf32>
      %c0_18 = arith.constant 0 : index
      %c0_19 = arith.constant 0 : index
      %23 = vector.load %arg7[%c0_18, %c0_19] : memref<1x512xf32, #tpu.memory_space<vmem>>, vector<1x512xf32>
      tpu.vector_store %arg7[%c0_18, %c0_19], %22 {strides = array<i32>} : memref<1x512xf32, #tpu.memory_space<vmem>>, vector<1x512xf32>,
      %cst_20 = arith.constant 0.000000e+00 : f32
      %24 = vector.broadcast %cst_20 : f32 to vector<1x512xf32>
      %c0_21 = arith.constant 0 : index
      %c0_22 = arith.constant 0 : index
      %25 = vector.load %arg8[%c0_21, %c0_22] : memref<1x512xf32, #tpu.memory_space<vmem>>, vector<1x512xf32>
      tpu.vector_store %arg8[%c0_21, %c0_22], %24 {strides = array<i32>} : memref<1x512xf32, #tpu.memory_space<vmem>>, vector<1x512xf32>,
    } else {
    }
    %c0 = arith.constant 0 : index
    %c0_1 = arith.constant 0 : index
    %3 = vector.load %arg2[%c0, %c0_1] : memref<1x512xf32, #tpu.memory_space<vmem>>, vector<1x512xf32>
    %c0_2 = arith.constant 0 : index
    %c0_3 = arith.constant 0 : index
    %4 = vector.load %arg3[%c0_2, %c0_3] : memref<1x512xf32, #tpu.memory_space<vmem>>, vector<1x512xf32>
    %c0_4 = arith.constant 0 : index
    %c0_5 = arith.constant 0 : index
    %5 = vector.load %arg4[%c0_4, %c0_5] : memref<1x512xf32, #tpu.memory_space<vmem>>, vector<1x512xf32>
    %6 = arith.subf %3, %4 : vector<1x512xf32>
    %7 = arith.mulf %6, %6 : vector<1x512xf32>
    %8 = arith.mulf %7, %5 : vector<1x512xf32>
    %c0_6 = arith.constant 0 : index
    %c0_7 = arith.constant 0 : index
    %9 = vector.load %arg7[%c0_6, %c0_7] : memref<1x512xf32, #tpu.memory_space<vmem>>, vector<1x512xf32>
    %cst = arith.constant dense<0.000000e+00> : vector<512xf32>
    %10 = vector.multi_reduction <add>, %8, %cst [0] : vector<1x512xf32> to vector<512xf32>
    %11 = vector.shape_cast %10 : vector<512xf32> to vector<1x512xf32>
    %12 = arith.addf %9, %11 : vector<1x512xf32>
    %c0_8 = arith.constant 0 : index
    %c0_9 = arith.constant 0 : index
    %13 = vector.load %arg7[%c0_8, %c0_9] : memref<1x512xf32, #tpu.memory_space<vmem>>, vector<1x512xf32>
    tpu.vector_store %arg7[%c0_8, %c0_9], %12 {strides = array<i32>} : memref<1x512xf32, #tpu.memory_space<vmem>>, vector<1x512xf32>,
    %c0_10 = arith.constant 0 : index
    %c0_11 = arith.constant 0 : index
    %14 = vector.load %arg8[%c0_10, %c0_11] : memref<1x512xf32, #tpu.memory_space<vmem>>, vector<1x512xf32>
    %cst_12 = arith.constant dense<0.000000e+00> : vector<512xf32>
    %15 = vector.multi_reduction <add>, %5, %cst_12 [0] : vector<1x512xf32> to vector<512xf32>
    %16 = vector.shape_cast %15 : vector<512xf32> to vector<1x512xf32>
    %17 = arith.addf %14, %16 : vector<1x512xf32>
    %c0_13 = arith.constant 0 : index
    %c0_14 = arith.constant 0 : index
    %18 = vector.load %arg8[%c0_13, %c0_14] : memref<1x512xf32, #tpu.memory_space<vmem>>, vector<1x512xf32>
    tpu.vector_store %arg8[%c0_13, %c0_14], %17 {strides = array<i32>} : memref<1x512xf32, #tpu.memory_space<vmem>>, vector<1x512xf32>,
    %c0_i32_15 = arith.constant 0 : i32
    %19 = arith.cmpi eq, %arg1, %c0_i32_15 : i32
    %20 = arith.extui %19 : i1 to i32
    %c0_i32_16 = arith.constant 0 : i32
    %21 = arith.cmpi ne, %20, %c0_i32_16 : i32
    scf.if %21 {
      %cst_17 = arith.constant 0.000000e+00 : f32
      %22 = vector.broadcast %cst_17 : f32 to vector<1x8x128xf32>
      %c0_18 = arith.constant 0 : index
      %c0_19 = arith.constant 0 : index
      %23 = vector.load %arg7[%c0_18, %c0_19] : memref<1x512xf32, #tpu.memory_space<vmem>>, vector<1x512xf32>
      %24 = vector.shape_cast %23 : vector<1x512xf32> to vector<1x1x512xf32>
      %cst_20 = arith.constant dense<0.000000e+00> : vector<1xf32>
      %25 = vector.multi_reduction <add>, %24, %cst_20 [1, 2] : vector<1x1x512xf32> to vector<1xf32>
      %26 = vector.shape_cast %25 : vector<1xf32> to vector<1x1x1xf32>
      %27 = vector.extract %26[0, 0, 0] : f32 from vector<1x1x1xf32>
      %28 = vector.broadcast %27 : f32 to vector<1x8x128xf32>
      %29 = arith.addf %22, %28 : vector<1x8x128xf32>
      %c0_21 = arith.constant 0 : index
      %c0_22 = arith.constant 0 : index
      %c0_23 = arith.constant 0 : index
      %30 = vector.load %arg5[%c0_21, %c0_22, %c0_23] : memref<1x8x128xf32, #tpu.memory_space<vmem>>, vector<1x8x128xf32>
      tpu.vector_store %arg5[%c0_21, %c0_22, %c0_23], %29 {strides = array<i32>} : memref<1x8x128xf32, #tpu.memory_space<vmem>>, vector<1x8x128xf32>,
      %cst_24 = arith.constant 0.000000e+00 : f32
      %31 = vector.broadcast %cst_24 : f32 to vector<1x8x128xf32>
      %c0_25 = arith.constant 0 : index
      %c0_26 = arith.constant 0 : index
      %32 = vector.load %arg8[%c0_25, %c0_26] : memref<1x512xf32, #tpu.memory_space<vmem>>, vector<1x512xf32>
      %33 = vector.shape_cast %32 : vector<1x512xf32> to vector<1x1x512xf32>
      %cst_27 = arith.constant dense<0.000000e+00> : vector<1xf32>
      %34 = vector.multi_reduction <add>, %33, %cst_27 [1, 2] : vector<1x1x512xf32> to vector<1xf32>
      %35 = vector.shape_cast %34 : vector<1xf32> to vector<1x1x1xf32>
      %36 = vector.extract %35[0, 0, 0] : f32 from vector<1x1x1xf32>
      %37 = vector.broadcast %36 : f32 to vector<1x8x128xf32>
      %38 = arith.addf %31, %37 : vector<1x8x128xf32>
      %c0_28 = arith.constant 0 : index
      %c0_29 = arith.constant 0 : index
      %c0_30 = arith.constant 0 : index
      %39 = vector.load %arg6[%c0_28, %c0_29, %c0_30] : memref<1x8x128xf32, #tpu.memory_space<vmem>>, vector<1x8x128xf32>
      tpu.vector_store %arg6[%c0_28, %c0_29, %c0_30], %38 {strides = array<i32>} : memref<1x8x128xf32, #tpu.memory_space<vmem>>, vector<1x8x128xf32>,
    } else {
    }
    return
  }
  func.func @transform_0(%arg0: i32, %arg1: i32) -> (i32, i32) {
    %c1_i32 = arith.constant 1 : i32
    %0 = arith.muli %arg0, %c1_i32 : i32
    %1 = arith.addi %0, %arg1 : i32
    %c0_i32 = arith.constant 0 : i32
    %c0_i32_0 = arith.constant 0 : i32
    return %1, %c0_i32 : i32, i32
  }
  func.func @transform_1(%arg0: i32, %arg1: i32) -> (i32, i32) {
    %c1_i32 = arith.constant 1 : i32
    %0 = arith.muli %arg0, %c1_i32 : i32
    %1 = arith.addi %0, %arg1 : i32
    %c0_i32 = arith.constant 0 : i32
    %c0_i32_0 = arith.constant 0 : i32
    return %1, %c0_i32 : i32, i32
  }
  func.func @transform_2(%arg0: i32, %arg1: i32) -> (i32, i32) {
    %c1_i32 = arith.constant 1 : i32
    %0 = arith.muli %arg0, %c1_i32 : i32
    %1 = arith.addi %0, %arg1 : i32
    %c0_i32 = arith.constant 0 : i32
    %c0_i32_0 = arith.constant 0 : i32
    return %1, %c0_i32 : i32, i32
  }
  func.func @transform_3(%arg0: i32, %arg1: i32) -> (i32, i32, i32) {
    %c0_i32 = arith.constant 0 : i32
    %c0_i32_0 = arith.constant 0 : i32
    %c0_i32_1 = arith.constant 0 : i32
    return %arg0, %c0_i32, %c0_i32_0 : i32, i32, i32
  }
  func.func @transform_4(%arg0: i32, %arg1: i32) -> (i32, i32, i32) {
    %c0_i32 = arith.constant 0 : i32
    %c0_i32_0 = arith.constant 0 : i32
    %c0_i32_1 = arith.constant 0 : i32
    return %arg0, %c0_i32, %c0_i32_0 : i32, i32, i32
  }
}

</mosaic_0001>

<bundles_post_ra>
// kernel: tpu_custom_call.1
= control target key start
LH: loop header
LB: loop body
LE: loop exit
PB: predicated region body
PF: predicated region fallthrough
CT: control target
= control target key end

     0   :  { %10 = vsyncpa [#allocation5], 0  ;;  %s425_s0 = inlined_call_operand.hbm [shape: f32[1,512], index: 0, kind: input, shape index: {}]   ;;  %s426_s1 = inlined_call_operand.hbm [shape: f32[1,512], index: 1, kind: input, shape index: {}]   ;;  %s427_s2 = inlined_call_operand.vmem [shape: f32[1,512], index: 2, kind: input, shape index: {}]   ;;  %s428_s3 = inlined_call_operand.hbm [shape: f32[1,8,128], index: 3, kind: output, shape index: {0}]   ;;  %s429_s4 = inlined_call_operand.hbm [shape: f32[1,8,128], index: 4, kind: output, shape index: {1}]  }
   0x1   :  { %11 = vsyncpa [#allocation8], 0 }
   0x2   :  { %12 = vsyncpa [#allocation6], 0 }
   0x3   :  { %13 = vsyncpa [#allocation11], 0  ;;  %s324_s15 = smov [#allocation4]   ;;  %s325_s17 = smov [#allocation7]  }
   0x4   :  { %s24_s16 = sshll.u32 %s324_s15, 4  ;;  %s38_s18 = sshll.u32 %s325_s17, 4  ;;  %s25_s16 = int_to_ptr.vmem [resolvable:$true] %s24_s16  ;;  %s39_s18 = int_to_ptr.vmem [resolvable:$true] %s38_s18 }
   0x5   :  { %s228_s21 = scalar_lea.hbm %s425_s0, 64 }
   0x6   :  { %p229_p0 = scmp.ne.s32.totalorder %s425_s0, %s228_s21  ;;  %p232_p1 = scmp.lt.u32.totalorder %s228_s21, %s425_s0 }
   0x8   :  { %p234_p2 = pnand %p232_p1, %p229_p0 }
   0xa   :  { %237 = shalt.err (!%p234_p2)
}
   0xb   :  { %s238_s26 = scalar_lea.vmem %s25_s16, 64  ;;  %p243_p4 = scmp.lt.s32.totalorder %s25_s16, %s25_s16 }
   0xc   :  { %p239_p3 = scmp.ne.s32.totalorder %s25_s16, %s238_s26  ;;  %p244_p5 = scmp.lt.s32.totalorder %s238_s26, %s238_s26 }
   0xe   :  { %p245_p6 = por %p244_p5, %p243_p4 }
  0x10   :  { %p246_p7 = pnand %p245_p6, %p239_p3 }
  0x12   :  { %249 = shalt.err (!%p246_p7)
}
  0x13   :  { %27 = dma.hbm_to_vmem [thread:$0]  %s425_s0, 64, %s25_s16, [#allocation5]  }
  0x14   :  { %s250_s5 = scalar_lea.hbm %s426_s1, 64 }
  0x15   :  { %p251_p8 = scmp.ne.s32.totalorder %s426_s1, %s250_s5  ;;  %p254_p9 = scmp.lt.u32.totalorder %s250_s5, %s426_s1 }
  0x17   :  { %p256_p10 = pnand %p254_p9, %p251_p8 }
  0x19   :  { %259 = shalt.err (!%p256_p10)
}
  0x1a   :  { %s260_s10 = scalar_lea.vmem %s39_s18, 64  ;;  %p265_p12 = scmp.lt.s32.totalorder %s39_s18, %s39_s18 }
  0x1b   :  { %p261_p11 = scmp.ne.s32.totalorder %s39_s18, %s260_s10  ;;  %p266_p13 = scmp.lt.s32.totalorder %s260_s10, %s260_s10 }
  0x1d   :  { %p267_p0 = por %p266_p13, %p265_p12 }
  0x1f   :  { %p268_p1 = pnand %p267_p0, %p261_p11 }
  0x21   :  { %271 = shalt.err (!%p268_p1)
}
  0x22   :  { %41 = dma.hbm_to_vmem [thread:$0]  %s426_s1, 64, %s39_s18, [#allocation8]  }
  0x23   :  { %316 = dma.done.wait [#allocation5], 64  }
  0x24   :  { %317 = vsyncadd [#allocation5], 4294967232 }
  0x25   :  { %318 = dma.done.wait [#allocation8], 64  }
  0x26   :  { %319 = vsyncadd [#allocation8], 4294967232  ;;  %v73_v0 = vlaneseq  ;;  %v326_v2 = vmov 0.0   ;;  %v79_v3 = vld [vmem:[#allocation4] sm:$0xf]  ;;  %vm122_vm1 = vcmask 1040384  }
  0x27   :  { %v80_v4 = vld [vmem:[#allocation7] sm:$0xf]  ;;  %v81_v6 = vld [vmem:[%s427_s2] sm:$0xf]  ;;  %s327_s2 = smov [#allocation9]   ;;  %s328_s15 = smov [#allocation10]  }
  0x28   :  { %vm378_vm0 = vcmp.lt.s32.totalorder %v73_v0, 512  ;;  %v82_v5 = vsub.f32 %v79_v3, %v80_v4  ;;  %v103_v13 = vshrl.u32 %v73_v0, 7  ;;  %s189_s13 = sshll.u32 %s327_s2, 4  ;;  %s199_s16 = sshll.u32 %s328_s15, 4  ;;  %s190_s13 = int_to_ptr.vmem [resolvable:$true] %s189_s13  ;;  %s200_s16 = int_to_ptr.vmem [resolvable:$true] %s199_s16 }
  0x29   :  { %77 = vst.msk [vmem:[#allocation2] sm:$0xf] %vm378_vm0, %v326_v2  ;;  %78 = vst.msk [vmem:[#allocation3] sm:$0xf] %vm378_vm0, %v326_v2  ;;  %s272_s17 = scalar_lea.vmem %s190_s13, 128  ;;  %p277_p3 = scmp.lt.s32.totalorder %s190_s13, %s190_s13 }
  0x2a   :  { %v83_v7 = vmul.f32 %v82_v5, %v82_v5  ;;  %v104_v14 = vsub.s32 0, %v103_v13  ;;  %v108_v15 = vsub.s32 1, %v103_v13  ;;  %v112_v16 = vsub.s32 2, %v103_v13  ;;  %p273_p2 = scmp.ne.s32.totalorder %s190_s13, %s272_s17  ;;  %p278_p4 = scmp.lt.s32.totalorder %s272_s17, %s272_s17 }
  0x2b   :  { %v116_v17 = vsub.s32 3, %v103_v13 }
  0x2c   :  { %v84_v11 = vmul.f32 %v83_v7, %v81_v6  ;;  %p279_p5 = por %p278_p4, %p277_p3 }
  0x2e   :  { %p280_p6 = pnand %p279_p5, %p273_p2 }
  0x30   :  { %v93_v8 = vld [vmem:[#allocation3] sm:$0xf]  ;;  %v85_v9 = vld [vmem:[#allocation2] sm:$0xf] }
  0x31   :  { %v95_v10 = vadd.f32 %v93_v8, %v81_v6  ;;  %v87_v12 = vadd.f32 %v85_v9, %v84_v11 }
  0x33   :  { %96 = vst.msk [vmem:[#allocation3] sm:$0xf] %vm378_vm0, %v95_v10  ;;  %92 = vst.msk [vmem:[#allocation2] sm:$0xf] %vm378_vm0, %v87_v12 }
  0x3a   :  { %v142_v18 = vld [vmem:[#allocation3] sm:$0xf]  ;;  %v100_v22 = vld [vmem:[#allocation2] sm:$0xf] }
  0x3b   :  { %v147_v19 = vrot.slane %v142_v18, %v104_v14  ;;  %v151_v20 = vrot.slane %v142_v18, %v108_v15  ;;  %v155_v21 = vrot.slane %v142_v18, %v112_v16  ;;  %v105_v25 = vrot.slane %v100_v22, %v104_v14 }
  0x3c   :  { %v109_v26 = vrot.slane %v100_v22, %v108_v15  ;;  %v113_v27 = vrot.slane %v100_v22, %v112_v16  ;;  %v117_v28 = vrot.slane %v100_v22, %v116_v17  ;;  %v159_v29 = vrot.slane %v142_v18, %v116_v17 }
  0x3d   :  { %v164_v23 = vsel %vm122_vm1, %v147_v19, 0.0  ;;  %v165_v24 = vsel %vm122_vm1, %v151_v20, 0.0  ;;  %v123_v31 = vsel %vm122_vm1, %v105_v25, 0.0  ;;  %v167_v34 = vsel %vm122_vm1, %v155_v21, 0.0 }
  0x3e   :  { %v166_v30 = vadd.f32 %v165_v24, %v164_v23  ;;  %v124_v32 = vsel %vm122_vm1, %v109_v26, 0.0  ;;  %v126_v33 = vsel %vm122_vm1, %v113_v27, 0.0  ;;  %v128_v36 = vsel %vm122_vm1, %v117_v28, 0.0 }
  0x3f   :  { %v125_v35 = vadd.f32 %v124_v32, %v123_v31  ;;  %v169_v39 = vsel %vm122_vm1, %v159_v29, 0.0 }
  0x40   :  { %v168_v38 = vadd.f32 %v167_v34, %v166_v30 }
  0x41   :  { %v127_v37 = vadd.f32 %v126_v33, %v125_v35 }
  0x42   :  { %v170_v41 = vadd.f32 %v169_v39, %v168_v38 }
  0x43   :  { %v129_v40 = vadd.f32 %v128_v36, %v127_v37 }
  0x45   :  { %130 = vadd.xlane.f32.xlu0 %v129_v40 }
  0x49   :  { %171 = vadd.xlane.f32.xlu0 %v170_v41 }
  0xd2   :  { %v131_v42 = vpop.xlane.xlu0 %130 }
  0xd3   :  { %v132_v43 = vrot.slane %v131_v42, 4 }
  0xd5   :  { %v133_v44 = vadd.f32 %v132_v43, %v131_v42 }
  0xd6   :  { %v172_v45 = vpop.xlane.xlu0 %171 }
  0xd7   :  { %v134_v46 = vrot.slane %v133_v44, 2  ;;  %v173_v47 = vrot.slane %v172_v45, 4 }
  0xd9   :  { %v174_v48 = vadd.f32 %v173_v47, %v172_v45  ;;  %v135_v49 = vadd.f32 %v134_v46, %v133_v44 }
  0xdb   :  { %v175_v50 = vrot.slane %v174_v48, 2  ;;  %v136_v51 = vrot.slane %v135_v49, 1 }
  0xdd   :  { %v176_v52 = vadd.f32 %v175_v50, %v174_v48  ;;  %v137_v53 = vadd.f32 %v136_v51, %v135_v49 }
  0xdf   :  { %219 = vpush %v137_v53  ;;  %v177_v54 = vrot.slane %v176_v52, 1 }
  0xe1   :  { %v178_v55 = vadd.f32 %v177_v54, %v176_v52 }
  0xe3   :  { %221 = vpush %v178_v55 }
 0x110   :  { %s220_s14 = spop %219 }
 0x111   :  { %v139_v56 = vstv %s220_s14 }
 0x112   :  { %141 = vst [vmem:[#allocation9] sm:$0xff] %v139_v56 }
 0x113   :  { %283 = shalt.err (!%p280_p6)
}
 0x114   :  { %s284_s20 = scalar_lea.hbm %s428_s3, 128 }
 0x115   :  { %p285_p7 = scmp.ne.s32.totalorder %s428_s3, %s284_s20  ;;  %p288_p8 = scmp.lt.u32.totalorder %s284_s20, %s428_s3 }
 0x117   :  { %p290_p9 = pnand %p288_p8, %p285_p7 }
 0x119   :  { %293 = shalt.err (!%p290_p9)
}
 0x11a   :  { %192 = dma.vmem_to_hbm [thread:$0]  %s190_s13, 128, %s428_s3, [#allocation6]  }
 0x11b   :  { %s222_s27 = spop %221  ;;  %s294_s28 = scalar_lea.vmem %s200_s16, 128 }
 0x11c   :  { %v180_v57 = vstv %s222_s27  ;;  %p295_p10 = scmp.ne.s32.totalorder %s200_s16, %s294_s28  ;;  %p299_p11 = scmp.lt.s32.totalorder %s200_s16, %s200_s16 }
 0x11d   :  { %182 = vst [vmem:[#allocation10] sm:$0xff] %v180_v57  ;;  %p300_p12 = scmp.lt.s32.totalorder %s294_s28, %s294_s28 }
 0x11f   :  { %p301_p13 = por %p300_p12, %p299_p11 }
 0x121   :  { %p302_p0 = pnand %p301_p13, %p295_p10 }
 0x123   :  { %305 = shalt.err (!%p302_p0)
}
 0x124   :  { %s306_s5 = scalar_lea.hbm %s429_s4, 128 }
 0x125   :  { %p307_p1 = scmp.ne.s32.totalorder %s429_s4, %s306_s5  ;;  %p310_p2 = scmp.lt.u32.totalorder %s306_s5, %s429_s4 }
 0x127   :  { %p312_p3 = pnand %p310_p2, %p307_p1 }
 0x129   :  { %315 = shalt.err (!%p312_p3)
}
 0x12a   :  { %202 = dma.vmem_to_hbm [thread:$0]  %s200_s16, 128, %s429_s4, [#allocation11]  }
 0x12b   :  { %320 = dma.done.wait [#allocation6], 128  }
 0x12c   :  { %321 = vsyncadd [#allocation6], 4294967168 }
 0x12d   :  { %322 = dma.done.wait [#allocation11], 128  }
 0x12e   :  { %323 = vsyncadd [#allocation11], 4294967168 }
 0x12f   :  { %209 = vsyncpa [#allocation5], 1 }
 0x130   :  { %210 = vsyncpa [#allocation8], 1 }
 0x131   :  { %211 = vsyncpa [#allocation6], 1 }
 0x132   :  { %212 = vsyncpa [#allocation11], 1 }

</bundles_post_ra>
